<compile_context>
chip_gen: v6e
topology: v6e:2x2x1
jax: 0.10.0
libtpu: 0.0.40
codegen_flags: <defaults>
</compile_context>

<pallas_src>
import functools

import jax
import jax.numpy as jnp
import numpy as np
from jax import lax
from jax.experimental import pallas as pl
from jax.experimental.pallas import tpu as pltpu

_LANE = 128


def _cdiv(a, b):
    return -(-a // b)


def _soft_dice_kernel(pred_ref, tgt_ref, out_ref, *,
                      n_classes, rg, square_nom, square_denom,
                      num_chunks, cps, groups_full_chunk, groups_last,
                      special, carry_in_regs, inner_unroll):
    """Accumulate per-class partial sums for the soft-dice loss.

    pred_ref: (1, C, r_block, 128) native dtype   -- one spatial chunk
    tgt_ref : (1, r_block, 128)    integer labels -- same chunk
    out_ref : (1, 3*C, rg, 128)    f32 accumulator, resident across chunks;
              rows [3c, 3c+1, 3c+2] hold (nom, i_sum, t_sum) partials of class c.
    """
    C = n_classes
    sj = pl.program_id(2)
    cid = pl.program_id(1) * cps + sj      # global spatial-chunk index

    @pl.when(sj == 0)
    def _init():
        out_ref[...] = jnp.zeros_like(out_ref)

    def softmax_rows(rows):
        # Class softmax, unrolled over C -> pure elementwise VPU/EUP ops.
        m = rows[0]
        for c in range(1, C):
            m = jnp.maximum(m, rows[c])
        es = [jnp.exp(r - m) for r in rows]
        den = es[0]
        for c in range(1, C):
            den = den + es[c]
        inv = pl.reciprocal(den, approx=True)
        inv = inv * (2.0 - den * inv)      # one Newton step (~1e-7 rel error)
        return [e * inv for e in es]

    def group_vals(start, gsize, lane_rem):
        """Per-class (nom, i_sum, t_sum) contributions of one (gsize,128) group."""
        t = tgt_ref[0, pl.ds(start, gsize), :].astype(jnp.int32)
        rows = [pred_ref[0, c, pl.ds(start, gsize), :].astype(jnp.float32)
                for c in range(C)]
        probs = softmax_rows(rows)
        if lane_rem:
            # Only the final 128-lane row of the whole tensor is partial; it is
            # the last row of this (single, statically known) group.
            r_i = lax.broadcasted_iota(jnp.int32, (gsize, _LANE), 0)
            l_i = lax.broadcasted_iota(jnp.int32, (gsize, _LANE), 1)
            valid = jnp.logical_or(r_i < gsize - 1, l_i < lane_rem)
        vals = []
        for c in range(C):
            smc = probs[c]
            i_val = smc * smc if square_denom else smc
            sel = t == c
            n_base = smc * smc if square_nom else smc
            if lane_rem:
                i_val = jnp.where(valid, i_val, 0.0)
                sel = jnp.logical_and(sel, valid)
            vals.append(jnp.where(sel, n_base, 0.0))   # nom contribution
            vals.append(i_val)                         # i_sum contribution
            vals.append(jnp.where(sel, 1.0, 0.0))      # t_sum contribution
        return vals

    def accumulate_groups(ngroups):
        """Process `ngroups` full, fully-valid (rg,128) groups of this chunk."""
        if ngroups <= 0:
            return
        if not carry_in_regs:
            # Many classes: avoid 3C register carries (spill cliff) and
            # accumulate straight into the resident output block.
            def body(g, _):
                start = pl.multiple_of(g * rg, rg)
                vals = group_vals(start, rg, 0)
                for i in range(3 * C):
                    out_ref[0, i] += vals[i]
                return 0
            lax.fori_loop(0, ngroups, body, 0)
            return
        if ngroups <= 2:
            for g in range(ngroups):
                vals = group_vals(g * rg, rg, 0)
                for i in range(3 * C):
                    out_ref[0, i] += vals[i]
            return
        zero = jnp.zeros((rg, _LANE), jnp.float32)

        def body(g, carry):
            start = pl.multiple_of(g * rg, rg)
            vals = group_vals(start, rg, 0)
            return tuple(carry[i] + vals[i] for i in range(3 * C))

        carry = lax.fori_loop(0, ngroups, body,
                              tuple(zero for _ in range(3 * C)),
                              unroll=inner_unroll)
        for i in range(3 * C):
            out_ref[0, i] += carry[i]

    def last_chunk():
        accumulate_groups(groups_last)
        if special is not None:
            start, gsize, lane_rem = special       # all static Python ints
            vals = group_vals(start, gsize, lane_rem)
            for i in range(3 * C):
                if gsize == rg:
                    out_ref[0, i] += vals[i]
                else:
                    out_ref[0, i, pl.ds(0, gsize), :] += vals[i]

    if num_chunks == 1:
        last_chunk()
    else:
        @pl.when(cid < num_chunks - 1)
        def _full():
            accumulate_groups(groups_full_chunk)

        @pl.when(cid == num_chunks - 1)
        def _last():
            last_chunk()
        # cid >= num_chunks (redundant slot from the 2-way chunk split) -> no-op.


def soft_dice_loss(predictions, targets, *, weight=None, smooth=1.0,
                   square_nom=False, square_denom=False,
                   target_block_bytes=4 << 20):
    """Pallas TPU implementation of SoftDiceLoss.forward.

    predictions: (N, C, *spatial) float array (f32 / bf16 / ...)
    targets    : (N, *spatial)    integer class labels
    """
    N = predictions.shape[0]
    C = predictions.shape[1]
    S = int(np.prod(predictions.shape[2:])) if predictions.ndim > 2 else 1

    p_item = int(np.dtype(predictions.dtype).itemsize)
    if (not jnp.issubdtype(targets.dtype, jnp.integer)
            or np.dtype(targets.dtype).itemsize > 4):
        targets = targets.astype(jnp.int32)
    t_item = int(np.dtype(targets.dtype).itemsize)

    # Dtype-aware sublane granule: packed dtypes need (16,128)/(32,128) tiles.
    g_pred = max(8, 32 // max(1, p_item))
    g_tgt = max(8, 32 // max(1, t_item))
    rg = int(np.lcm(g_pred, g_tgt))

    lane_rem = S % _LANE
    R = _cdiv(S, _LANE)                    # rows holding any valid data

    p = predictions.reshape(N, C, S)
    t = targets.reshape(N, S)
    if lane_rem:
        # Unavoidable full copy: the lane-dense (rows, 128) layout requires the
        # flattened spatial axis to be a multiple of 128.  Pads only to the
        # next 128 multiple; when S % 128 == 0 the path below is copy-free.
        pad = R * _LANE - S
        p = jnp.pad(p, ((0, 0), (0, 0), (0, pad)))
        t = jnp.pad(t, ((0, 0), (0, pad)))
    p = p.reshape(N, C, R, _LANE)          # free (bitcast) reshape
    t = t.reshape(N, R, _LANE)

    # Spatial chunking (~target_block_bytes of predictions per grid step).
    rows_target = max(rg, (target_block_bytes // max(1, C * _LANE * p_item))
                      // rg * rg)
    if R <= rows_target:
        r_block = R                        # full-dim block: always legal
        num_chunks = 1
    else:
        r_block = rows_target
        if R % r_block:
            # Prefer a block size that divides R (no ragged final block).
            best = 0
            for cand in range(rg, rows_target + 1, rg):
                if R % cand == 0:
                    best = cand
            if best >= max(rg, rows_target // 4):
                r_block = best
        num_chunks = _cdiv(R, r_block)

    # Split the chunk axis in two so both v7x TensorCores get work for small N.
    n_split = 2 if num_chunks >= 2 else 1
    cps = _cdiv(num_chunks, n_split)

    rows_last = R - (num_chunks - 1) * r_block
    if lane_rem or (rows_last % rg):
        gsize = rows_last % rg or rg
        groups_last = (rows_last - gsize) // rg
        special = (groups_last * rg, gsize, lane_rem)
    else:
        groups_last = rows_last // rg
        special = None
    groups_full_chunk = (r_block // rg) if num_chunks > 1 else 0

    carry_in_regs = (3 * C * max(1, rg // 8)) <= 24
    inner_unroll = 2 if (carry_in_regs and C * max(1, rg // 8) <= 4) else 1

    kernel = functools.partial(
        _soft_dice_kernel,
        n_classes=C,
        rg=rg,
        square_nom=bool(square_nom),
        square_denom=bool(square_denom),
        num_chunks=num_chunks,
        cps=cps,
        groups_full_chunk=groups_full_chunk,
        groups_last=groups_last,
        special=special,
        carry_in_regs=carry_in_regs,
        inner_unroll=inner_unroll,
    )

    sums = pl.pallas_call(
        kernel,
        out_shape=jax.ShapeDtypeStruct((N * n_split, 3 * C, rg, _LANE),
                                       jnp.float32),
        grid=(N, n_split, cps),
        in_specs=[
            pl.BlockSpec(
                (1, C, r_block, _LANE),
                lambda n, h, sj: (n, 0,
                                  jnp.minimum(h * cps + sj, num_chunks - 1), 0)),
            pl.BlockSpec(
                (1, r_block, _LANE),
                lambda n, h, sj: (n,
                                  jnp.minimum(h * cps + sj, num_chunks - 1), 0)),
        ],
        out_specs=pl.BlockSpec(
            (1, 3 * C, rg, _LANE),
            lambda n, h, sj: (n * n_split + h, 0, 0, 0)),
        compiler_params=pltpu.CompilerParams(
            dimension_semantics=("parallel", "parallel", "arbitrary")),
    )(p, t)

    # Tiny finalize in plain JAX (glue, not the hot path): fold the core/chunk
    # halves and the (rg, 128) accumulator lanes, then the dice math.
    sums = sums.reshape(N, n_split, C, 3, rg, _LANE)
    sums = jnp.sum(sums, axis=(1, 4, 5))           # (N, C, 3)
    nom = 2.0 * sums[..., 0] + smooth
    den = sums[..., 1] + sums[..., 2] + smooth
    frac = nom / den
    if weight is not None:
        frac = jnp.asarray(weight, jnp.float32).reshape(1, C) * frac
    return jnp.mean(1.0 - jnp.mean(frac, axis=1))


def _soft_dice_reference(predictions, targets, *, weight=None, smooth=1.0,
                         square_nom=False, square_denom=False):
    """Pure-JAX reference matching the PyTorch module semantics."""
    n_classes = predictions.shape[1]
    pred = jax.nn.softmax(predictions.astype(jnp.float32), axis=1)
    onehot = jax.nn.one_hot(targets, n_classes, axis=1, dtype=jnp.float32)
    dims = tuple(range(2, pred.ndim))
    prod = pred * onehot
    if square_nom:
        prod = prod ** 2
    nom = 2.0 * jnp.sum(prod, axis=dims) + smooth
    if square_denom:
        i_sum = jnp.sum(pred ** 2, axis=dims)
        t_sum = jnp.sum(onehot ** 2, axis=dims)
    else:
        i_sum = jnp.sum(pred, axis=dims)
        t_sum = jnp.sum(onehot, axis=dims)
    frac = nom / (i_sum + t_sum + smooth)
    if weight is not None:
        frac = jnp.asarray(weight, jnp.float32) * frac
    return jnp.mean(1.0 - jnp.mean(frac, axis=1))


if __name__ == "__main__":
    key = jax.random.PRNGKey(0)

    def run_case(preds, tgts, tol=1e-5, target_block_bytes=4 << 20, **kw):
        loss = jax.block_until_ready(
            soft_dice_loss(preds, tgts, target_block_bytes=target_block_bytes,
                           **kw))
        ref = _soft_dice_reference(preds, tgts, **kw)
        np.testing.assert_allclose(np.asarray(loss), np.asarray(ref),
                                   rtol=tol, atol=tol)

    # Case 1: small 2-D, S % 128 == 0 -> zero-copy path, single chunk,
    #         2-row partial group; class weights.
    k1, k2, key = jax.random.split(key, 3)
    preds = jax.random.normal(k1, (2, 4, 16, 16), dtype=jnp.float32)
    tgts = jax.random.randint(k2, (2, 16, 16), 0, 4, dtype=jnp.int32)
    run_case(preds, tgts, weight=jnp.array([1.0, 0.5, 2.0, 1.5]), smooth=1.0)

    # Case 2: 3-D volume, S % 128 != 0 -> minimal lane pad + masked final
    #         group; squared nom/denom; odd class count.
    k1, k2, key = jax.random.split(key, 3)
    preds = jax.random.normal(k1, (2, 3, 7, 50, 50), dtype=jnp.float32)
    tgts = jax.random.randint(k2, (2, 7, 50, 50), 0, 3, dtype=jnp.int32)
    run_case(preds, tgts, smooth=1.0, square_nom=True, square_denom=True)

    # Case 3: forced multi-chunk grid (4 chunks -> 2-way chunk split),
    #         cross-step accumulation, weights + square_denom.
    k1, k2, key = jax.random.split(key, 3)
    preds = jax.random.normal(k1, (1, 4, 64, 64), dtype=jnp.float32)
    tgts = jax.random.randint(k2, (1, 64, 64), 0, 4, dtype=jnp.int32)
    run_case(preds, tgts, weight=jnp.array([2.0, 1.0, 1.0, 0.25]), smooth=0.5,
             square_denom=True, target_block_bytes=16 * 1024)

    # Case 4: odd chunk count (3) -> redundant split slot is clamped/skipped.
    k1, k2, key = jax.random.split(key, 3)
    preds = jax.random.normal(k1, (2, 4, 96, 128), dtype=jnp.float32)
    tgts = jax.random.randint(k2, (2, 96, 128), 0, 4, dtype=jnp.int32)
    run_case(preds, tgts, smooth=1.0, target_block_bytes=64 * 1024)

    # Case 5: bf16 predictions -> dtype-aware (16, 128) sublane granule.
    k1, k2, key = jax.random.split(key, 3)
    preds = jax.random.normal(k1, (2, 3, 32, 128), dtype=jnp.bfloat16)
    tgts = jax.random.randint(k2, (2, 32, 128), 0, 3, dtype=jnp.int32)
    run_case(preds, tgts, smooth=1.0, tol=2e-5)

    print("KERNEL_OK")
</pallas_src>

<mosaic_0001>
module attributes {stable_mosaic.version = 11 : i64} {
  func.func @_soft_dice_kernel(%arg0: i32, %arg1: i32, %arg2: i32, %arg3: memref<1x4x2x128xf32, #tpu.memory_space<vmem>>, %arg4: memref<1x2x128xi32, #tpu.memory_space<vmem>>, %arg5: memref<1x12x8x128xf32, #tpu.memory_space<vmem>>) attributes {dimension_semantics = [#tpu.dimension_semantics<parallel>, #tpu.dimension_semantics<parallel>, #tpu.dimension_semantics<arbitrary>], iteration_bounds = array<i64: 2, 1, 1>, scalar_prefetch = 0 : i64, scratch_operands = 0 : i64, tpu.core_type = #tpu.core_type<tc>, window_params = [{transform_indices = @transform_0, window_bounds = array<i64: 1, 4, 2, 128>}, {transform_indices = @transform_1, window_bounds = array<i64: 1, 2, 128>}, {transform_indices = @transform_2, window_bounds = array<i64: 1, 12, 8, 128>}]} {
    %c0_i32 = arith.constant 0 : i32
    %0 = arith.cmpi eq, %arg2, %c0_i32 : i32
    %1 = arith.extui %0 : i1 to i32
    %c0_i32_0 = arith.constant 0 : i32
    %2 = arith.cmpi ne, %1, %c0_i32_0 : i32
    scf.if %2 {
      %cst_117 = arith.constant 0.000000e+00 : f32
      %136 = vector.broadcast %cst_117 : f32 to vector<1x12x8x128xf32>
      %c0_118 = arith.constant 0 : index
      %c0_119 = arith.constant 0 : index
      %c0_120 = arith.constant 0 : index
      %c0_121 = arith.constant 0 : index
      %137 = vector.load %arg5[%c0_118, %c0_119, %c0_120, %c0_121] : memref<1x12x8x128xf32, #tpu.memory_space<vmem>>, vector<1x12x8x128xf32>
      tpu.vector_store %arg5[%c0_118, %c0_119, %c0_120, %c0_121], %136 {strides = array<i32>} : memref<1x12x8x128xf32, #tpu.memory_space<vmem>>, vector<1x12x8x128xf32>,
    } else {
    }
    %c0 = arith.constant 0 : index
    %c0_1 = arith.constant 0 : index
    %c0_2 = arith.constant 0 : index
    %3 = vector.load %arg4[%c0, %c0_1, %c0_2] : memref<1x2x128xi32, #tpu.memory_space<vmem>>, vector<1x2x128xi32>
    %4 = vector.shape_cast %3 : vector<1x2x128xi32> to vector<2x128xi32>
    %c0_3 = arith.constant 0 : index
    %c0_4 = arith.constant 0 : index
    %c0_5 = arith.constant 0 : index
    %c0_6 = arith.constant 0 : index
    %5 = vector.load %arg3[%c0_3, %c0_4, %c0_5, %c0_6] : memref<1x4x2x128xf32, #tpu.memory_space<vmem>>, vector<1x1x2x128xf32>
    %6 = vector.shape_cast %5 : vector<1x1x2x128xf32> to vector<2x128xf32>
    %c0_7 = arith.constant 0 : index
    %c1 = arith.constant 1 : index
    %c0_8 = arith.constant 0 : index
    %c0_9 = arith.constant 0 : index
    %7 = vector.load %arg3[%c0_7, %c1, %c0_8, %c0_9] : memref<1x4x2x128xf32, #tpu.memory_space<vmem>>, vector<1x1x2x128xf32>
    %8 = vector.shape_cast %7 : vector<1x1x2x128xf32> to vector<2x128xf32>
    %c0_10 = arith.constant 0 : index
    %c2 = arith.constant 2 : index
    %c0_11 = arith.constant 0 : index
    %c0_12 = arith.constant 0 : index
    %9 = vector.load %arg3[%c0_10, %c2, %c0_11, %c0_12] : memref<1x4x2x128xf32, #tpu.memory_space<vmem>>, vector<1x1x2x128xf32>
    %10 = vector.shape_cast %9 : vector<1x1x2x128xf32> to vector<2x128xf32>
    %c0_13 = arith.constant 0 : index
    %c3 = arith.constant 3 : index
    %c0_14 = arith.constant 0 : index
    %c0_15 = arith.constant 0 : index
    %11 = vector.load %arg3[%c0_13, %c3, %c0_14, %c0_15] : memref<1x4x2x128xf32, #tpu.memory_space<vmem>>, vector<1x1x2x128xf32>
    %12 = vector.shape_cast %11 : vector<1x1x2x128xf32> to vector<2x128xf32>
    %13 = arith.maximumf %6, %8 : vector<2x128xf32>
    %14 = arith.maximumf %13, %10 : vector<2x128xf32>
    %15 = arith.maximumf %14, %12 : vector<2x128xf32>
    %16 = arith.subf %6, %15 : vector<2x128xf32>
    %17 = math.exp %16 : vector<2x128xf32>
    %18 = arith.subf %8, %15 : vector<2x128xf32>
    %19 = math.exp %18 : vector<2x128xf32>
    %20 = arith.subf %10, %15 : vector<2x128xf32>
    %21 = math.exp %20 : vector<2x128xf32>
    %22 = arith.subf %12, %15 : vector<2x128xf32>
    %23 = math.exp %22 : vector<2x128xf32>
    %24 = arith.addf %17, %19 : vector<2x128xf32>
    %25 = arith.addf %24, %21 : vector<2x128xf32>
    %26 = arith.addf %25, %23 : vector<2x128xf32>
    %27 = tpu.reciprocal %26 {approx = true} : vector<2x128xf32> -> vector<2x128xf32>
    %28 = arith.mulf %26, %27 : vector<2x128xf32>
    %cst = arith.constant 2.000000e+00 : f32
    %29 = vector.broadcast %cst : f32 to vector<2x128xf32>
    %30 = arith.subf %29, %28 : vector<2x128xf32>
    %31 = arith.mulf %27, %30 : vector<2x128xf32>
    %32 = arith.mulf %17, %31 : vector<2x128xf32>
    %33 = arith.mulf %19, %31 : vector<2x128xf32>
    %34 = arith.mulf %21, %31 : vector<2x128xf32>
    %35 = arith.mulf %23, %31 : vector<2x128xf32>
    %c0_i32_16 = arith.constant 0 : i32
    %36 = vector.broadcast %c0_i32_16 : i32 to vector<2x128xi32>
    %37 = arith.cmpi eq, %4, %36 : vector<2x128xi32>
    %cst_17 = arith.constant 0.000000e+00 : f32
    %38 = vector.broadcast %cst_17 : f32 to vector<2x128xf32>
    %39 = arith.select %37, %32, %38 : vector<2x128xi1>, vector<2x128xf32>
    %cst_18 = arith.constant 1.000000e+00 : f32
    %cst_19 = arith.constant 0.000000e+00 : f32
    %40 = vector.broadcast %cst_18 : f32 to vector<2x128xf32>
    %41 = vector.broadcast %cst_19 : f32 to vector<2x128xf32>
    %42 = arith.select %37, %40, %41 : vector<2x128xi1>, vector<2x128xf32>
    %c1_i32 = arith.constant 1 : i32
    %43 = vector.broadcast %c1_i32 : i32 to vector<2x128xi32>
    %44 = arith.cmpi eq, %4, %43 : vector<2x128xi32>
    %cst_20 = arith.constant 0.000000e+00 : f32
    %45 = vector.broadcast %cst_20 : f32 to vector<2x128xf32>
    %46 = arith.select %44, %33, %45 : vector<2x128xi1>, vector<2x128xf32>
    %cst_21 = arith.constant 1.000000e+00 : f32
    %cst_22 = arith.constant 0.000000e+00 : f32
    %47 = vector.broadcast %cst_21 : f32 to vector<2x128xf32>
    %48 = vector.broadcast %cst_22 : f32 to vector<2x128xf32>
    %49 = arith.select %44, %47, %48 : vector<2x128xi1>, vector<2x128xf32>
    %c2_i32 = arith.constant 2 : i32
    %50 = vector.broadcast %c2_i32 : i32 to vector<2x128xi32>
    %51 = arith.cmpi eq, %4, %50 : vector<2x128xi32>
    %cst_23 = arith.constant 0.000000e+00 : f32
    %52 = vector.broadcast %cst_23 : f32 to vector<2x128xf32>
    %53 = arith.select %51, %34, %52 : vector<2x128xi1>, vector<2x128xf32>
    %cst_24 = arith.constant 1.000000e+00 : f32
    %cst_25 = arith.constant 0.000000e+00 : f32
    %54 = vector.broadcast %cst_24 : f32 to vector<2x128xf32>
    %55 = vector.broadcast %cst_25 : f32 to vector<2x128xf32>
    %56 = arith.select %51, %54, %55 : vector<2x128xi1>, vector<2x128xf32>
    %c3_i32 = arith.constant 3 : i32
    %57 = vector.broadcast %c3_i32 : i32 to vector<2x128xi32>
    %58 = arith.cmpi eq, %4, %57 : vector<2x128xi32>
    %cst_26 = arith.constant 0.000000e+00 : f32
    %59 = vector.broadcast %cst_26 : f32 to vector<2x128xf32>
    %60 = arith.select %58, %35, %59 : vector<2x128xi1>, vector<2x128xf32>
    %cst_27 = arith.constant 1.000000e+00 : f32
    %cst_28 = arith.constant 0.000000e+00 : f32
    %61 = vector.broadcast %cst_27 : f32 to vector<2x128xf32>
    %62 = vector.broadcast %cst_28 : f32 to vector<2x128xf32>
    %63 = arith.select %58, %61, %62 : vector<2x128xi1>, vector<2x128xf32>
    %c0_29 = arith.constant 0 : index
    %c0_30 = arith.constant 0 : index
    %c0_31 = arith.constant 0 : index
    %c0_32 = arith.constant 0 : index
    %64 = vector.load %arg5[%c0_29, %c0_30, %c0_31, %c0_32] : memref<1x12x8x128xf32, #tpu.memory_space<vmem>>, vector<1x1x2x128xf32>
    %65 = vector.shape_cast %64 : vector<1x1x2x128xf32> to vector<2x128xf32>
    %66 = arith.addf %65, %39 : vector<2x128xf32>
    %c0_33 = arith.constant 0 : index
    %c0_34 = arith.constant 0 : index
    %c0_35 = arith.constant 0 : index
    %c0_36 = arith.constant 0 : index
    %67 = vector.load %arg5[%c0_33, %c0_34, %c0_35, %c0_36] : memref<1x12x8x128xf32, #tpu.memory_space<vmem>>, vector<1x1x2x128xf32>
    %68 = vector.shape_cast %67 : vector<1x1x2x128xf32> to vector<2x128xf32>
    %69 = vector.shape_cast %66 : vector<2x128xf32> to vector<1x1x2x128xf32>
    tpu.vector_store %arg5[%c0_33, %c0_34, %c0_35, %c0_36], %69 {strides = array<i32>} : memref<1x12x8x128xf32, #tpu.memory_space<vmem>>, vector<1x1x2x128xf32>,
    %c0_37 = arith.constant 0 : index
    %c1_38 = arith.constant 1 : index
    %c0_39 = arith.constant 0 : index
    %c0_40 = arith.constant 0 : index
    %70 = vector.load %arg5[%c0_37, %c1_38, %c0_39, %c0_40] : memref<1x12x8x128xf32, #tpu.memory_space<vmem>>, vector<1x1x2x128xf32>
    %71 = vector.shape_cast %70 : vector<1x1x2x128xf32> to vector<2x128xf32>
    %72 = arith.addf %71, %32 : vector<2x128xf32>
    %c0_41 = arith.constant 0 : index
    %c1_42 = arith.constant 1 : index
    %c0_43 = arith.constant 0 : index
    %c0_44 = arith.constant 0 : index
    %73 = vector.load %arg5[%c0_41, %c1_42, %c0_43, %c0_44] : memref<1x12x8x128xf32, #tpu.memory_space<vmem>>, vector<1x1x2x128xf32>
    %74 = vector.shape_cast %73 : vector<1x1x2x128xf32> to vector<2x128xf32>
    %75 = vector.shape_cast %72 : vector<2x128xf32> to vector<1x1x2x128xf32>
    tpu.vector_store %arg5[%c0_41, %c1_42, %c0_43, %c0_44], %75 {strides = array<i32>} : memref<1x12x8x128xf32, #tpu.memory_space<vmem>>, vector<1x1x2x128xf32>,
    %c0_45 = arith.constant 0 : index
    %c2_46 = arith.constant 2 : index
    %c0_47 = arith.constant 0 : index
    %c0_48 = arith.constant 0 : index
    %76 = vector.load %arg5[%c0_45, %c2_46, %c0_47, %c0_48] : memref<1x12x8x128xf32, #tpu.memory_space<vmem>>, vector<1x1x2x128xf32>
    %77 = vector.shape_cast %76 : vector<1x1x2x128xf32> to vector<2x128xf32>
    %78 = arith.addf %77, %42 : vector<2x128xf32>
    %c0_49 = arith.constant 0 : index
    %c2_50 = arith.constant 2 : index
    %c0_51 = arith.constant 0 : index
    %c0_52 = arith.constant 0 : index
    %79 = vector.load %arg5[%c0_49, %c2_50, %c0_51, %c0_52] : memref<1x12x8x128xf32, #tpu.memory_space<vmem>>, vector<1x1x2x128xf32>
    %80 = vector.shape_cast %79 : vector<1x1x2x128xf32> to vector<2x128xf32>
    %81 = vector.shape_cast %78 : vector<2x128xf32> to vector<1x1x2x128xf32>
    tpu.vector_store %arg5[%c0_49, %c2_50, %c0_51, %c0_52], %81 {strides = array<i32>} : memref<1x12x8x128xf32, #tpu.memory_space<vmem>>, vector<1x1x2x128xf32>,
    %c0_53 = arith.constant 0 : index
    %c3_54 = arith.constant 3 : index
    %c0_55 = arith.constant 0 : index
    %c0_56 = arith.constant 0 : index
    %82 = vector.load %arg5[%c0_53, %c3_54, %c0_55, %c0_56] : memref<1x12x8x128xf32, #tpu.memory_space<vmem>>, vector<1x1x2x128xf32>
    %83 = vector.shape_cast %82 : vector<1x1x2x128xf32> to vector<2x128xf32>
    %84 = arith.addf %83, %46 : vector<2x128xf32>
    %c0_57 = arith.constant 0 : index
    %c3_58 = arith.constant 3 : index
    %c0_59 = arith.constant 0 : index
    %c0_60 = arith.constant 0 : index
    %85 = vector.load %arg5[%c0_57, %c3_58, %c0_59, %c0_60] : memref<1x12x8x128xf32, #tpu.memory_space<vmem>>, vector<1x1x2x128xf32>
    %86 = vector.shape_cast %85 : vector<1x1x2x128xf32> to vector<2x128xf32>
    %87 = vector.shape_cast %84 : vector<2x128xf32> to vector<1x1x2x128xf32>
    tpu.vector_store %arg5[%c0_57, %c3_58, %c0_59, %c0_60], %87 {strides = array<i32>} : memref<1x12x8x128xf32, #tpu.memory_space<vmem>>, vector<1x1x2x128xf32>,
    %c0_61 = arith.constant 0 : index
    %c4 = arith.constant 4 : index
    %c0_62 = arith.constant 0 : index
    %c0_63 = arith.constant 0 : index
    %88 = vector.load %arg5[%c0_61, %c4, %c0_62, %c0_63] : memref<1x12x8x128xf32, #tpu.memory_space<vmem>>, vector<1x1x2x128xf32>
    %89 = vector.shape_cast %88 : vector<1x1x2x128xf32> to vector<2x128xf32>
    %90 = arith.addf %89, %33 : vector<2x128xf32>
    %c0_64 = arith.constant 0 : index
    %c4_65 = arith.constant 4 : index
    %c0_66 = arith.constant 0 : index
    %c0_67 = arith.constant 0 : index
    %91 = vector.load %arg5[%c0_64, %c4_65, %c0_66, %c0_67] : memref<1x12x8x128xf32, #tpu.memory_space<vmem>>, vector<1x1x2x128xf32>
    %92 = vector.shape_cast %91 : vector<1x1x2x128xf32> to vector<2x128xf32>
    %93 = vector.shape_cast %90 : vector<2x128xf32> to vector<1x1x2x128xf32>
    tpu.vector_store %arg5[%c0_64, %c4_65, %c0_66, %c0_67], %93 {strides = array<i32>} : memref<1x12x8x128xf32, #tpu.memory_space<vmem>>, vector<1x1x2x128xf32>,
    %c0_68 = arith.constant 0 : index
    %c5 = arith.constant 5 : index
    %c0_69 = arith.constant 0 : index
    %c0_70 = arith.constant 0 : index
    %94 = vector.load %arg5[%c0_68, %c5, %c0_69, %c0_70] : memref<1x12x8x128xf32, #tpu.memory_space<vmem>>, vector<1x1x2x128xf32>
    %95 = vector.shape_cast %94 : vector<1x1x2x128xf32> to vector<2x128xf32>
    %96 = arith.addf %95, %49 : vector<2x128xf32>
    %c0_71 = arith.constant 0 : index
    %c5_72 = arith.constant 5 : index
    %c0_73 = arith.constant 0 : index
    %c0_74 = arith.constant 0 : index
    %97 = vector.load %arg5[%c0_71, %c5_72, %c0_73, %c0_74] : memref<1x12x8x128xf32, #tpu.memory_space<vmem>>, vector<1x1x2x128xf32>
    %98 = vector.shape_cast %97 : vector<1x1x2x128xf32> to vector<2x128xf32>
    %99 = vector.shape_cast %96 : vector<2x128xf32> to vector<1x1x2x128xf32>
    tpu.vector_store %arg5[%c0_71, %c5_72, %c0_73, %c0_74], %99 {strides = array<i32>} : memref<1x12x8x128xf32, #tpu.memory_space<vmem>>, vector<1x1x2x128xf32>,
    %c0_75 = arith.constant 0 : index
    %c6 = arith.constant 6 : index
    %c0_76 = arith.constant 0 : index
    %c0_77 = arith.constant 0 : index
    %100 = vector.load %arg5[%c0_75, %c6, %c0_76, %c0_77] : memref<1x12x8x128xf32, #tpu.memory_space<vmem>>, vector<1x1x2x128xf32>
    %101 = vector.shape_cast %100 : vector<1x1x2x128xf32> to vector<2x128xf32>
    %102 = arith.addf %101, %53 : vector<2x128xf32>
    %c0_78 = arith.constant 0 : index
    %c6_79 = arith.constant 6 : index
    %c0_80 = arith.constant 0 : index
    %c0_81 = arith.constant 0 : index
    %103 = vector.load %arg5[%c0_78, %c6_79, %c0_80, %c0_81] : memref<1x12x8x128xf32, #tpu.memory_space<vmem>>, vector<1x1x2x128xf32>
    %104 = vector.shape_cast %103 : vector<1x1x2x128xf32> to vector<2x128xf32>
    %105 = vector.shape_cast %102 : vector<2x128xf32> to vector<1x1x2x128xf32>
    tpu.vector_store %arg5[%c0_78, %c6_79, %c0_80, %c0_81], %105 {strides = array<i32>} : memref<1x12x8x128xf32, #tpu.memory_space<vmem>>, vector<1x1x2x128xf32>,
    %c0_82 = arith.constant 0 : index
    %c7 = arith.constant 7 : index
    %c0_83 = arith.constant 0 : index
    %c0_84 = arith.constant 0 : index
    %106 = vector.load %arg5[%c0_82, %c7, %c0_83, %c0_84] : memref<1x12x8x128xf32, #tpu.memory_space<vmem>>, vector<1x1x2x128xf32>
    %107 = vector.shape_cast %106 : vector<1x1x2x128xf32> to vector<2x128xf32>
    %108 = arith.addf %107, %34 : vector<2x128xf32>
    %c0_85 = arith.constant 0 : index
    %c7_86 = arith.constant 7 : index
    %c0_87 = arith.constant 0 : index
    %c0_88 = arith.constant 0 : index
    %109 = vector.load %arg5[%c0_85, %c7_86, %c0_87, %c0_88] : memref<1x12x8x128xf32, #tpu.memory_space<vmem>>, vector<1x1x2x128xf32>
    %110 = vector.shape_cast %109 : vector<1x1x2x128xf32> to vector<2x128xf32>
    %111 = vector.shape_cast %108 : vector<2x128xf32> to vector<1x1x2x128xf32>
    tpu.vector_store %arg5[%c0_85, %c7_86, %c0_87, %c0_88], %111 {strides = array<i32>} : memref<1x12x8x128xf32, #tpu.memory_space<vmem>>, vector<1x1x2x128xf32>,
    %c0_89 = arith.constant 0 : index
    %c8 = arith.constant 8 : index
    %c0_90 = arith.constant 0 : index
    %c0_91 = arith.constant 0 : index
    %112 = vector.load %arg5[%c0_89, %c8, %c0_90, %c0_91] : memref<1x12x8x128xf32, #tpu.memory_space<vmem>>, vector<1x1x2x128xf32>
    %113 = vector.shape_cast %112 : vector<1x1x2x128xf32> to vector<2x128xf32>
    %114 = arith.addf %113, %56 : vector<2x128xf32>
    %c0_92 = arith.constant 0 : index
    %c8_93 = arith.constant 8 : index
    %c0_94 = arith.constant 0 : index
    %c0_95 = arith.constant 0 : index
    %115 = vector.load %arg5[%c0_92, %c8_93, %c0_94, %c0_95] : memref<1x12x8x128xf32, #tpu.memory_space<vmem>>, vector<1x1x2x128xf32>
    %116 = vector.shape_cast %115 : vector<1x1x2x128xf32> to vector<2x128xf32>
    %117 = vector.shape_cast %114 : vector<2x128xf32> to vector<1x1x2x128xf32>
    tpu.vector_store %arg5[%c0_92, %c8_93, %c0_94, %c0_95], %117 {strides = array<i32>} : memref<1x12x8x128xf32, #tpu.memory_space<vmem>>, vector<1x1x2x128xf32>,
    %c0_96 = arith.constant 0 : index
    %c9 = arith.constant 9 : index
    %c0_97 = arith.constant 0 : index
    %c0_98 = arith.constant 0 : index
    %118 = vector.load %arg5[%c0_96, %c9, %c0_97, %c0_98] : memref<1x12x8x128xf32, #tpu.memory_space<vmem>>, vector<1x1x2x128xf32>
    %119 = vector.shape_cast %118 : vector<1x1x2x128xf32> to vector<2x128xf32>
    %120 = arith.addf %119, %60 : vector<2x128xf32>
    %c0_99 = arith.constant 0 : index
    %c9_100 = arith.constant 9 : index
    %c0_101 = arith.constant 0 : index
    %c0_102 = arith.constant 0 : index
    %121 = vector.load %arg5[%c0_99, %c9_100, %c0_101, %c0_102] : memref<1x12x8x128xf32, #tpu.memory_space<vmem>>, vector<1x1x2x128xf32>
    %122 = vector.shape_cast %121 : vector<1x1x2x128xf32> to vector<2x128xf32>
    %123 = vector.shape_cast %120 : vector<2x128xf32> to vector<1x1x2x128xf32>
    tpu.vector_store %arg5[%c0_99, %c9_100, %c0_101, %c0_102], %123 {strides = array<i32>} : memref<1x12x8x128xf32, #tpu.memory_space<vmem>>, vector<1x1x2x128xf32>,
    %c0_103 = arith.constant 0 : index
    %c10 = arith.constant 10 : index
    %c0_104 = arith.constant 0 : index
    %c0_105 = arith.constant 0 : index
    %124 = vector.load %arg5[%c0_103, %c10, %c0_104, %c0_105] : memref<1x12x8x128xf32, #tpu.memory_space<vmem>>, vector<1x1x2x128xf32>
    %125 = vector.shape_cast %124 : vector<1x1x2x128xf32> to vector<2x128xf32>
    %126 = arith.addf %125, %35 : vector<2x128xf32>
    %c0_106 = arith.constant 0 : index
    %c10_107 = arith.constant 10 : index
    %c0_108 = arith.constant 0 : index
    %c0_109 = arith.constant 0 : index
    %127 = vector.load %arg5[%c0_106, %c10_107, %c0_108, %c0_109] : memref<1x12x8x128xf32, #tpu.memory_space<vmem>>, vector<1x1x2x128xf32>
    %128 = vector.shape_cast %127 : vector<1x1x2x128xf32> to vector<2x128xf32>
    %129 = vector.shape_cast %126 : vector<2x128xf32> to vector<1x1x2x128xf32>
    tpu.vector_store %arg5[%c0_106, %c10_107, %c0_108, %c0_109], %129 {strides = array<i32>} : memref<1x12x8x128xf32, #tpu.memory_space<vmem>>, vector<1x1x2x128xf32>,
    %c0_110 = arith.constant 0 : index
    %c11 = arith.constant 11 : index
    %c0_111 = arith.constant 0 : index
    %c0_112 = arith.constant 0 : index
    %130 = vector.load %arg5[%c0_110, %c11, %c0_111, %c0_112] : memref<1x12x8x128xf32, #tpu.memory_space<vmem>>, vector<1x1x2x128xf32>
    %131 = vector.shape_cast %130 : vector<1x1x2x128xf32> to vector<2x128xf32>
    %132 = arith.addf %131, %63 : vector<2x128xf32>
    %c0_113 = arith.constant 0 : index
    %c11_114 = arith.constant 11 : index
    %c0_115 = arith.constant 0 : index
    %c0_116 = arith.constant 0 : index
    %133 = vector.load %arg5[%c0_113, %c11_114, %c0_115, %c0_116] : memref<1x12x8x128xf32, #tpu.memory_space<vmem>>, vector<1x1x2x128xf32>
    %134 = vector.shape_cast %133 : vector<1x1x2x128xf32> to vector<2x128xf32>
    %135 = vector.shape_cast %132 : vector<2x128xf32> to vector<1x1x2x128xf32>
    tpu.vector_store %arg5[%c0_113, %c11_114, %c0_115, %c0_116], %135 {strides = array<i32>} : memref<1x12x8x128xf32, #tpu.memory_space<vmem>>, vector<1x1x2x128xf32>,
    return
  }
  func.func @transform_0(%arg0: i32, %arg1: i32, %arg2: i32) -> (i32, i32, i32, i32) {
    %c1_i32 = arith.constant 1 : i32
    %0 = arith.muli %arg1, %c1_i32 : i32
    %1 = arith.addi %0, %arg2 : i32
    %c0_i32 = arith.constant 0 : i32
    %2 = arith.minsi %1, %c0_i32 : i32
    %c0_i32_0 = arith.constant 0 : i32
    %c0_i32_1 = arith.constant 0 : i32
    %c0_i32_2 = arith.constant 0 : i32
    return %arg0, %c0_i32_0, %2, %c0_i32_1 : i32, i32, i32, i32
  }
  func.func @transform_1(%arg0: i32, %arg1: i32, %arg2: i32) -> (i32, i32, i32) {
    %c1_i32 = arith.constant 1 : i32
    %0 = arith.muli %arg1, %c1_i32 : i32
    %1 = arith.addi %0, %arg2 : i32
    %c0_i32 = arith.constant 0 : i32
    %2 = arith.minsi %1, %c0_i32 : i32
    %c0_i32_0 = arith.constant 0 : i32
    %c0_i32_1 = arith.constant 0 : i32
    return %arg0, %2, %c0_i32_0 : i32, i32, i32
  }
  func.func @transform_2(%arg0: i32, %arg1: i32, %arg2: i32) -> (i32, i32, i32, i32) {
    %c1_i32 = arith.constant 1 : i32
    %0 = arith.muli %arg0, %c1_i32 : i32
    %1 = arith.addi %0, %arg1 : i32
    %c0_i32 = arith.constant 0 : i32
    %c0_i32_0 = arith.constant 0 : i32
    %c0_i32_1 = arith.constant 0 : i32
    %c0_i32_2 = arith.constant 0 : i32
    return %1, %c0_i32, %c0_i32_0, %c0_i32_1 : i32, i32, i32, i32
  }
}

</mosaic_0001>

<bundles_post_ra>
// kernel: tpu_custom_call.1
= control target key start
LH: loop header
LB: loop body
LE: loop exit
PB: predicated region body
PF: predicated region fallthrough
CT: control target
= control target key end

     0   :  { %7 = vsyncpa [#allocation3], 0  ;;  %s1014_s0 = inlined_call_operand.hbm [shape: f32[2,4,2,128], index: 0, kind: input, shape index: {}]   ;;  %s1015_s1 = inlined_call_operand.hbm [shape: s32[2,2,128], index: 1, kind: input, shape index: {}]   ;;  %s1016_s2 = inlined_call_operand.hbm [shape: f32[2,12,8,128], index: 2, kind: output, shape index: {}]  }
   0x1   :  { %9 = vsyncpa [#allocation3 + $0x1], 0 }
   0x2   :  { %10 = vsyncpa [#allocation6], 0 }
   0x3   :  { %12 = vsyncpa [#allocation6 + $0x1], 0 }
   0x4   :  { %13 = vsyncpa [#allocation4], 0 }
   0x5   :  { %15 = vsyncpa [#allocation4 + $0x1], 0  ;;  %s776_s9 = smov 0   ;;  %s778_s10 = smov 0  }
   0x6   :  { %s780_s11 = smov 0   ;;  %s782_s12 = smov 0  }
   0x7   :  { %s784_s13 = smov 0   ;;  %s786_s14 = smov 0  }
   0x8 LB: > { %s486_s15 = sadd.s32 4294967295, %s751_s14   ;;  %s487_s16 = sadd.s32 4294967294, %s751_s14   ;;  %s751_s14 = sphi %s786_s14, %s21_s14   ;;  %s747_s13 = sphi %s784_s13, %s1027_s13   ;;  %s743_s12 = sphi %s782_s12, %s1026_s12   ;;  %s739_s11 = sphi %s780_s11, %s1025_s11   ;;  %s735_s10 = sphi %s778_s10, %s1024_s10   ;;  %s731_s9 = sphi %s776_s9, %s1023_s9  }
   0x9   : > { %s40_s17 = sadd.s32 1, %s747_s13  ;;  %s55_s18 = sadd.s32 1, %s739_s11 }
   0xa   : > { %p42_p0 = scmp.ge.s32.totalorder %s40_s17, 2  ;;  %p62_p1 = scmp.ne.s32.totalorder %s739_s11, %s735_s10 }
   0xb   : > { %p63_p2 = scmp.eq.s32.totalorder %s751_s14, 0  ;;  %p68_p3 = scmp.ne.s32.totalorder %s735_s10, %s731_s9 }
   0xc   : > { %s1029_s17 = smov (%p42_p0, %s40_s17), 0  ;;  %p69_p5 = scmp.eq.s32.totalorder %s486_s15, 0 }
   0xd   : > { %p817_p4 = por %p63_p2, %p62_p1  ;;  %s50_s20 = ssub.s32 %s747_s13, %s1029_s17 }
   0xe   : > { %p128_p6 = scmp.eq.s32.totalorder %s486_s15, 1  ;;  %p53_p7 = scmp.eq.s32.totalorder %s50_s20, 0 }
   0xf   : > { %p823_p8 = por %p69_p5, %p68_p3  ;;  %p134_p10 = scmp.eq.s32.totalorder %s487_s16, 1 }
  0x10   : > { %p827_p9 = por %p128_p6, %p62_p1  ;;  %p489_p12 = scmp.ge.s32.totalorder %s751_s14, 2 }
  0x11   : > { %s832_s23 = scalar_select %p53_p7, %s739_s11, %s55_s18  }
  0x12   : > { %p834_p11 = por %p134_p10, %p68_p3  ;;  %p546_p13 = scmp.lt.s32.totalorder %s751_s14, 2 }
  0x13   : > { %s841_s25 = sand.u32 1, %s739_s11   ;;  %s526_s27 = sshll.u32 %s747_s13, 7 }
  0x14   : > { %s490_s26 = sshll.u32 %s841_s25, 3  ;;  %s168_s30 = scalar_lea.hbm %s1014_s0, %s526_s27 }
  0x15   : > { %s158_s3 = scalar_lea.vmem [#allocation2], %s490_s26  ;;  %p850_p0 = pnand %p546_p13, %p817_p4 }
  0x16   : > { %s169_s4 = sshll.u32 %s158_s3, 4  ;;  %p495_p1 = scmp.ge.s32.totalorder %s751_s14, 1  ;;  %s170_s4 = int_to_ptr.vmem [resolvable:$true] %s169_s4 }
  0x17   : > { %s155_s6 = scalar_lea.sflag [#allocation3], %s841_s25  ;;  %p613_p2 = pneg %p850_p0 }
  0x18   : > { %s624_s7 = scalar_lea.vmem %s170_s4, 128  ;;  %s753_s8 = smov [#allocation2]  }
  0x19   : > { %p625_p3 = scmp.ne.s32.totalorder %s170_s4, %s624_s7  ;;  %s629_s15 = sshll.u32 %s753_s8, 4  ;;  %s630_s15 = int_to_ptr.vmem [resolvable:$false] %s629_s15 }
  0x1a   : > { %s631_s16 = scalar_lea.vmem %s630_s15, 256  ;;  %p632_p4 = scmp.lt.s32.totalorder %s170_s4, %s630_s15 }
  0x1b   : > { %p627_p5 = pnand %p625_p3, %p613_p2  ;;  %p633_p7 = scmp.lt.s32.totalorder %s631_s16, %s624_s7 }
  0x1d   : > { %p628_p6 = pneg %p627_p5  ;;  %p634_p10 = por %p633_p7, %p632_p4 }
  0x1f   : > { %p635_p13 = pnand %p634_p10, %p628_p6 }
  0x21   : > { %638 = shalt.err (!%p635_p13)
}
  0x22   : > { %s754_s18 = smov 32   ;;  %s755_s19 = smov 2  }
  0x23   : > { %538 = dma.hbm_to_vmem [thread:$0]  (!%p850_p0), %s168_s30, 128, %s170_s4, %s155_s6, %s754_s18, %s754_s18, %s755_s19  }
  0x24   : > { %p199_p3 = scmp.lt.s32.totalorder %s751_s14, 3  ;;  %s493_s20 = sshll.u32 %s841_s25, 1 }
  0x25   : > { %s494_s26 = sshll.u32 %s747_s13, 5  ;;  %s183_s7 = scalar_lea.vmem [#allocation5], %s493_s20 }
  0x26   : > { %p868_p5 = pnand %p495_p1, %p199_p3  ;;  %s192_s3 = scalar_lea.hbm %s1015_s1, %s494_s26 }
  0x27   : > { %s194_s8 = sshll.u32 %s183_s7, 4  ;;  %s180_s15 = scalar_lea.sflag [#allocation6], %s841_s25  ;;  %s195_s8 = int_to_ptr.vmem [resolvable:$true] %s194_s8 }
  0x28   : > { %s652_s16 = scalar_lea.vmem %s195_s8, 32  ;;  %s756_s30 = smov [#allocation5]  }
  0x29   : > { %p653_p6 = scmp.ne.s32.totalorder %s195_s8, %s652_s16  ;;  %s657_s4 = sshll.u32 %s756_s30, 4  ;;  %s658_s4 = int_to_ptr.vmem [resolvable:$false] %s657_s4 }
  0x2a   : > { %s659_s6 = scalar_lea.vmem %s658_s4, 64  ;;  %p660_p1 = scmp.lt.s32.totalorder %s195_s8, %s658_s4 }
  0x2b   : > { %p655_p4 = pnand %p653_p6, %p613_p2  ;;  %p661_p10 = scmp.lt.s32.totalorder %s659_s6, %s652_s16 }
  0x2d   : > { %p656_p7 = pneg %p655_p4  ;;  %p662_p13 = por %p661_p10, %p660_p1 }
  0x2f   : > { %p663_p3 = pnand %p662_p13, %p656_p7 }
  0x31   : > { %666 = shalt.err (!%p663_p3)
}
  0x32   : > { %541 = dma.hbm_to_vmem [thread:$0]  (!%p850_p0), %s192_s3, 32, %s195_s8, %s180_s15  }
  0x33   : > { %203 = sbr.rel (%p868_p5) target bundleno = 134 (0x86), region = 28  ;;  %s884_s25 = sand.u32 (!%p868_p5), 1, %s735_s10  }
  0x34   : > { %s496_s18 = sshll.u32 (!%p868_p5), %s884_s25, 3  ;;  %s206_s19 = scalar_lea.sflag (!%p868_p5), [#allocation3], %s884_s25 }
  0x35   : > { %s209_s20 = scalar_lea.vmem (!%p868_p5), [#allocation2], %s496_s18 }
  0x38   : > { %718 = dma.done.wait (%p823_p8), %s206_s19, 128  }
  0x39   : > { %720 = vsyncadd (%p823_p8), %s206_s19, 4294967168  ;;  %s497_s5 = sshll.u32 %s884_s25, 1  ;;  %s215_s26 = scalar_lea.sflag [#allocation6], %s884_s25 }
  0x3a   : > { %s218_s27 = scalar_lea.vmem [#allocation5], %s497_s5 }
  0x3b   : > { %722 = dma.done.wait (%p823_p8), %s215_s26, 32  }
  0x3c   : > { %724 = vsyncadd (%p823_p8), %s215_s26, 4294967264  ;;  %s527_s28 = smul.u32 96, %s884_s25  ;;  %v757_v0 = vmov 0.0   ;;  %v913_v1 = vld [vmem:[%s218_s27] sm:$0x3]  ;;  %s361_s15 = scalar_lea.sflag [#allocation4], %s884_s25 }
  0x3d   : > { %v268_v2 = vld [vmem:[%s209_s20] sm:$0x3]  ;;  %v498_v3 = vld [vmem:[%s209_s20 + $0x2] sm:$0x3]  ;;  %v499_v4 = vld [vmem:[%s209_s20 + $0x4] sm:$0x3] }
  0x3e   : > { %s899_s29 = scalar_lea.vmem [#allocation7], %s527_s28  ;;  %v275_v5 = vmax.f32 %v268_v2, %v498_v3  ;;  %vm301_vm0 = vcmp.eq.s32.totalorder %v913_v1, 0  ;;  %vm304_vm1 = vcmp.eq.s32.totalorder %v913_v1, 1  ;;  %v500_v6 = vld [vmem:[%s209_s20 + $0x6] sm:$0x3]  ;;  %vm307_vm2 = vcmp.eq.s32.totalorder %v913_v1, 2 }
  0x3f   : > { %255 = vst [vmem:[%s899_s29] sm:$0xff] %v757_v0  ;;  %256 = vst [vmem:[%s899_s29 + $0x8] sm:$0xff] %v757_v0  ;;  %v303_v7 = vsel %vm301_vm0, 1.0, %v757_v0  ;;  %v306_v8 = vsel %vm304_vm1, 1.0, %v757_v0  ;;  %vm310_vm3 = vcmp.eq.s32.totalorder %v913_v1, 3  ;;  %v309_v15 = vsel %vm307_vm2, 1.0, %v757_v0  ;;  %s528_s21 = smul.u32 1536, %s743_s12 }
  0x40   : > { %257 = vst [vmem:[%s899_s29 + $0x10] sm:$0xff] %v757_v0  ;;  %258 = vst [vmem:[%s899_s29 + $0x18] sm:$0xff] %v757_v0  ;;  %v276_v9 = vmax.f32 %v275_v5, %v499_v4  ;;  %v312_v16 = vsel %vm310_vm3, 1.0, %v757_v0  ;;  %s375_s3 = sshll.u32 %s899_s29, 4  ;;  %s758_s30 = smov [#allocation7]   ;;  %s963_s3 = int_to_ptr.vmem [resolvable:$true] %s375_s3 }
  0x41   : > { %259 = vst [vmem:[%s899_s29 + $0x20] sm:$0xff] %v757_v0  ;;  %260 = vst [vmem:[%s899_s29 + $0x28] sm:$0xff] %v757_v0  ;;  %s961_s8 = scalar_lea.hbm %s1016_s2, %s528_s21  ;;  %s667_s16 = scalar_lea.vmem %s963_s3, 1536 }
  0x42   : > { %261 = vst [vmem:[%s899_s29 + $0x30] sm:$0xff] %v757_v0  ;;  %262 = vst [vmem:[%s899_s29 + $0x38] sm:$0xff] %v757_v0  ;;  %v277_v13 = vmax.f32 %v276_v9, %v500_v6  ;;  %p668_p8 = scmp.ne.s32.totalorder %s963_s3, %s667_s16  ;;  %s671_s4 = sshll.u32 %s758_s30, 4  ;;  %s672_s4 = int_to_ptr.vmem [resolvable:$false] %s671_s4 }
  0x43   : > { %263 = vst [vmem:[%s899_s29 + $0x40] sm:$0xff] %v757_v0  ;;  %264 = vst [vmem:[%s899_s29 + $0x48] sm:$0xff] %v757_v0  ;;  %s673_s6 = scalar_lea.vmem %s672_s4, 3072  ;;  %p674_p5 = scmp.lt.s32.totalorder %s963_s3, %s672_s4 }
  0x44   : > { %265 = vst [vmem:[%s899_s29 + $0x50] sm:$0xff] %v757_v0  ;;  %266 = vst [vmem:[%s899_s29 + $0x58] sm:$0xff] %v757_v0  ;;  %v278_v18 = vsub.f32 %v268_v2, %v277_v13  ;;  %v281_v19 = vsub.f32 %v498_v3, %v277_v13  ;;  %v284_v20 = vsub.f32 %v499_v4, %v277_v13  ;;  %p669_p0 = pnand %p668_p8, %p827_p9  ;;  %p675_p6 = scmp.lt.s32.totalorder %s673_s6, %s667_s16 }
  0x45   : > { %v287_v21 = vsub.f32 %v500_v6, %v277_v13 }
  0x46   : > { %v279_v25 = vmul.f32 1.442695, %v278_v18  ;;  %v282_v26 = vmul.f32 1.442695, %v281_v19  ;;  %v285_v27 = vmul.f32 1.442695, %v284_v20  ;;  %p670_p2 = pneg %p669_p0  ;;  %p676_p4 = por %p675_p6, %p674_p5 }
  0x47   : > { %v503_v10 = vld [vmem:[%s899_s29 + $0x10] sm:$0x3]  ;;  %v288_v28 = vmul.f32 1.442695, %v287_v21  ;;  %v501_v40 = vld [vmem:[%s899_s29 + $0x8] sm:$0x3] }
  0x48   : > { %v322_v11 = vadd.f32 %v503_v10, %v303_v7  ;;  %v509_v12 = vld [vmem:[%s899_s29 + $0x28] sm:$0x3]  ;;  %601 = vpow2.f32 %v279_v25  ;;  %v507_v41 = vld [vmem:[%s899_s29 + $0x20] sm:$0x3]  ;;  %v505_v45 = vld [vmem:[%s899_s29 + $0x18] sm:$0x3]  ;;  %p677_p7 = pnand %p676_p4, %p670_p2 }
  0x49   : > { %v334_v14 = vadd.f32 %v509_v12, %v306_v8  ;;  %603 = vpow2.f32 %v282_v26  ;;  %v313_v43 = vld [vmem:[%s899_s29] sm:$0x3]  ;;  %v513_v47 = vld [vmem:[%s899_s29 + $0x38] sm:$0x3]  ;;  %v511_v49 = vld [vmem:[%s899_s29 + $0x30] sm:$0x3] }
  0x4a   : > { %504 = vst [vmem:[%s899_s29 + $0x10] sm:$0x3] %v322_v11  ;;  %v515_v17 = vld [vmem:[%s899_s29 + $0x40] sm:$0x3]  ;;  %605 = vpow2.f32 %v285_v27  ;;  %v517_v55 = vld [vmem:[%s899_s29 + $0x48] sm:$0x3] }
  0x4b   : > { %510 = vst [vmem:[%s899_s29 + $0x28] sm:$0x3] %v334_v14  ;;  %v521_v22 = vld [vmem:[%s899_s29 + $0x58] sm:$0x3]  ;;  %v346_v23 = vadd.f32 %v515_v17, %v309_v15  ;;  %607 = vpow2.f32 %v288_v28  ;;  %v519_v50 = vld [vmem:[%s899_s29 + $0x50] sm:$0x3] }
  0x4c   : > { %v358_v24 = vadd.f32 %v521_v22, %v312_v16 }
  0x4d   : > { %516 = vst [vmem:[%s899_s29 + $0x40] sm:$0x3] %v346_v23 }
  0x4e   : > { %522 = vst [vmem:[%s899_s29 + $0x58] sm:$0x3] %v358_v24 }
  0x55   : > { %v602_v29 = vpop.eup %601 }
  0x56   : > { %v604_v30 = vpop.eup %603 }
  0x57   : > { %v606_v31 = vpop.eup %605  ;;  %v290_v32 = vadd.f32 %v604_v30, %v602_v29 }
  0x58   : > { %v608_v33 = vpop.eup %607 }
  0x59   : > { %v291_v34 = vadd.f32 %v606_v31, %v290_v32 }
  0x5b   : > { %v292_v35 = vadd.f32 %v608_v33, %v291_v34 }
  0x5d   : > { %609 = vrcp.f32 %v292_v35 }
  0x6a   : > { %v610_v36 = vpop.eup %609 }
  0x6b   : > { %v294_v37 = vmul.f32 %v610_v36, %v292_v35 }
  0x6d   : > { %v295_v38 = vsub.f32 2.0, %v294_v37 }
  0x6f   : > { %v296_v39 = vmul.f32 %v610_v36, %v295_v38 }
  0x71   : > { %v297_v42 = vmul.f32 %v602_v29, %v296_v39  ;;  %v298_v44 = vmul.f32 %v604_v30, %v296_v39  ;;  %v299_v46 = vmul.f32 %v606_v31, %v296_v39  ;;  %v300_v48 = vmul.f32 %v608_v33, %v296_v39 }
  0x73   : > { %v302_v51 = vsel %vm301_vm0, %v297_v42, 0.0  ;;  %v318_v52 = vadd.f32 %v501_v40, %v297_v42  ;;  %v305_v53 = vsel %vm304_vm1, %v298_v44, 0.0  ;;  %v330_v54 = vadd.f32 %v507_v41, %v298_v44 }
  0x74   : > { %v314_v56 = vadd.f32 %v313_v43, %v302_v51  ;;  %v326_v57 = vadd.f32 %v505_v45, %v305_v53  ;;  %v308_v58 = vsel %vm307_vm2, %v299_v46, 0.0  ;;  %v342_v59 = vadd.f32 %v513_v47, %v299_v46 }
  0x75   : > { %502 = vst [vmem:[%s899_s29 + $0x8] sm:$0x3] %v318_v52  ;;  %508 = vst [vmem:[%s899_s29 + $0x20] sm:$0x3] %v330_v54  ;;  %v338_v60 = vadd.f32 %v511_v49, %v308_v58  ;;  %v311_v61 = vsel %vm310_vm3, %v300_v48, 0.0  ;;  %v354_v62 = vadd.f32 %v519_v50, %v300_v48 }
  0x76   : > { %315 = vst [vmem:[%s899_s29] sm:$0x3] %v314_v56  ;;  %506 = vst [vmem:[%s899_s29 + $0x18] sm:$0x3] %v326_v57  ;;  %v350_v63 = vadd.f32 %v517_v55, %v311_v61 }
  0x77   : > { %514 = vst [vmem:[%s899_s29 + $0x38] sm:$0x3] %v342_v59  ;;  %512 = vst [vmem:[%s899_s29 + $0x30] sm:$0x3] %v338_v60 }
  0x78   : > { %520 = vst [vmem:[%s899_s29 + $0x50] sm:$0x3] %v354_v62  ;;  %518 = vst [vmem:[%s899_s29 + $0x48] sm:$0x3] %v350_v63 }
  0x79   : > { %680 = shalt.err (!%p677_p7)
}
  0x7a   : > { %s681_s18 = scalar_lea.hbm %s961_s8, 1536  ;;  %s685_s5 = scalar_lea.hbm %s1016_s2, 3072 }
  0x7b   : > { %p682_p1 = scmp.ne.s32.totalorder %s961_s8, %s681_s18  ;;  %p686_p3 = scmp.lt.s32.totalorder %s961_s8, %s1016_s2 }
  0x7c   : > { %p687_p8 = scmp.lt.s32.totalorder %s685_s5, %s681_s18 }
  0x7d   : > { %p683_p10 = pnand %p682_p1, %p827_p9 }
  0x7e   : > { %p688_p0 = por %p687_p8, %p686_p3 }
  0x7f   : > { %p684_p13 = pneg %p683_p10 }
  0x81   : > { %p689_p2 = pnand %p688_p0, %p684_p13 }
  0x83   : > { %692 = shalt.err (!%p689_p2)
}
  0x84   : > { %s759_s28 = smov 128   ;;  %s760_s29 = smov 8  }
  0x85   : > { %533 = dma.vmem_to_hbm [thread:$0]  (%p827_p9), %s963_s3, 1536, %s961_s8, %s361_s15, %s759_s28, %s759_s28, %s760_s29  }
  0x86 PF: > { %s390_s21 = sand.u32 1, %s731_s9   ;;  %p543_p5 = pnand %p489_p12, %p834_p11 }
  0x87   : > { %s391_s12 = scalar_lea.sflag [#allocation4], %s390_s21 }
  0x88   : > { %p544_p6 = pneg %p543_p5 }
  0x8a   : > { %726 = dma.done.wait (%p544_p6), %s391_s12, 1536  }
  0x8b   : > { %728 = vsyncadd (%p544_p6), %s391_s12, 4294965760  ;;  %s21_s14 = sadd.s32 1, %s751_s14   ;;  %s1023_s9 = smov %s735_s10 }
  0x8c   : > { %p18_p4 = scmp.ge.s32.totalorder %s21_s14, 4   ;;  %s1024_s10 = smov %s739_s11 }
  0x8d   : > { %s1025_s11 = smov %s832_s23  ;;  %s1026_s12 = smov %s747_s13 }
  0x8e   : > { %s1027_s13 = smov %s1029_s17  ;;  %20 = sbr.rel (!%p18_p4) target bundleno = 8 (0x8), region = 104 }
  0x93   :  { %396 = vsyncpa [#allocation3], 1 }
  0x94   :  { %398 = vsyncpa [#allocation3 + $0x1], 1 }
  0x95   :  { %399 = vsyncpa [#allocation6], 1 }
  0x96   :  { %401 = vsyncpa [#allocation6 + $0x1], 1 }
  0x97   :  { %402 = vsyncpa [#allocation4], 1 }
  0x98   :  { %404 = vsyncpa [#allocation4 + $0x1], 1 }

</bundles_post_ra>
